<compile_context>
chip_gen: v7x
topology: tpu7x:2x2x1
jax: 0.10.0
libtpu: 0.0.40
codegen_flags: <defaults>
</compile_context>

<pallas_src>
import functools

import jax
import jax.numpy as jnp
from jax.experimental import pallas as pl
from jax.experimental.pallas import tpu as pltpu

_HEAD_LANES = 128  # lane-dense width for the last layer / head outputs


# ----------------------------------------------------------------------------
# Fused kernel: all EdgeGraphConv layers + combined head matmul, one graph per
# grid step. Everything for one graph is resident in VMEM; layers unrolled.
# ----------------------------------------------------------------------------
def egnnc_fused_kernel(*refs, n_layers, apply_acts):
    a_ref, h0_ref = refs[0], refs[1]                 # (N,N) bf16, (N,f_in) bf16
    layer_refs = refs[2:2 + 2 * n_layers]            # [W0,b0,W1,b1,...]
    wh_ref = refs[2 + 2 * n_layers]                  # (128,128) bf16 combined head
    h_out_ref, head_ref = refs[3 + 2 * n_layers], refs[4 + 2 * n_layers]

    h = h0_ref[...]                                  # bf16 (N, f_in)
    h_f32 = None
    for i in range(n_layers):
        w = layer_refs[2 * i][...]                   # bf16 (f_in_i, f_out_i)
        b = layer_refs[2 * i + 1][...]               # f32  (1,     f_out_i)
        # (A @ H) @ W — A streamed from VMEM per matmul (short live ranges),
        # bf16 operands, f32 accumulation.
        ah = jnp.dot(a_ref[...], h, preferred_element_type=jnp.float32)
        h_f32 = jnp.dot(ah.astype(jnp.bfloat16), w,
                        preferred_element_type=jnp.float32) + b
        if apply_acts[i]:
            h_f32 = jnp.maximum(h_f32, 0.0)          # activation = ReLU
        h = h_f32.astype(jnp.bfloat16)

    # Last layer is zero-padded to _HEAD_LANES lanes -> unmasked lane-dense store.
    h_out_ref[...] = h_f32.astype(h_out_ref.dtype)

    # Combined heads: col 0 = policy logits (pre-bias), col 1 = value column
    # (pre-mean, pre-bias). Bias add + node-mean happen host-side.
    head = jnp.dot(h, wh_ref[...], preferred_element_type=jnp.float32)
    head_ref[...] = head.astype(head_ref.dtype)


# ----------------------------------------------------------------------------
# One-time parameter preparation (outside the per-forward / RL-loop hot path).
# ----------------------------------------------------------------------------
def prepare_egnnc_params(layer_params, policy_params, value_params):
    n_layers = len(layer_params)
    out_feats = layer_params[-1][0].shape[1]

    prepped = []
    for i, (w, b) in enumerate(layer_params):
        if i == n_layers - 1:
            # lane-pad the last layer to 128 output lanes (zeros beyond out_feats)
            w_pad = jnp.zeros((w.shape[0], _HEAD_LANES), jnp.float32)
            w_pad = w_pad.at[:, :out_feats].set(w)
            b_pad = jnp.zeros((1, _HEAD_LANES), jnp.float32)
            b_pad = b_pad.at[:, :out_feats].set(b)
            prepped.append((w_pad.astype(jnp.bfloat16), b_pad))
        else:
            prepped.append((w.astype(jnp.bfloat16), b))

    wp, bp = policy_params
    wv, bv = value_params
    wh = jnp.zeros((_HEAD_LANES, _HEAD_LANES), jnp.float32)
    wh = wh.at[:out_feats, 0].set(wp[:, 0]).at[:out_feats, 1].set(wv[:, 0])

    return dict(layers=prepped, wh=wh.astype(jnp.bfloat16), bp=bp, bv=bv,
                n_layers=n_layers, out_feats=out_feats)


# ----------------------------------------------------------------------------
# Batched forward: grid=(B,) over graphs, one fused kernel invocation per graph.
# ----------------------------------------------------------------------------
def egnnc_forward(a_norm_b, h0_b, params):
    B, N, in_feats = h0_b.shape
    n_layers = params["n_layers"]
    out_feats = params["out_feats"]
    prepped_layers = params["layers"]
    wh = params["wh"]

    apply_acts = tuple((i != n_layers - 1) and (n_layers > 1)
                       for i in range(n_layers))

    # Conservative VMEM budget guard for the untiled per-graph block
    # (double-buffered bf16 A/h0, double-buffered f32 outputs, head weight).
    bytes_est = (2 * (N * N * 2 + N * in_feats * 2)
                 + 4 * (N * _HEAD_LANES * 4)
                 + 2 * _HEAD_LANES * _HEAD_LANES * 2)
    assert bytes_est < 12 * 1024 * 1024, (
        "graph too large for the untiled EGNNC kernel; tile A")
    # TODO(synk): add a row-tiled fallback (A as (tm, N) blocks on a second grid
    # axis, with a cross-tile reduction for the value-head mean) once N grows.

    kernel = functools.partial(egnnc_fused_kernel,
                               n_layers=n_layers, apply_acts=apply_acts)

    flat_layer_args, layer_specs = [], []
    for (w, b) in prepped_layers:
        flat_layer_args += [w, b]
        layer_specs += [pl.BlockSpec(w.shape, lambda g: (0, 0)),
                        pl.BlockSpec(b.shape, lambda g: (0, 0))]

    in_specs = ([pl.BlockSpec((None, N, N), lambda g: (g, 0, 0)),
                 pl.BlockSpec((None, N, in_feats), lambda g: (g, 0, 0))]
                + layer_specs
                + [pl.BlockSpec(wh.shape, lambda g: (0, 0))])

    h_pad, head = pl.pallas_call(
        kernel,
        out_shape=(jax.ShapeDtypeStruct((B, N, _HEAD_LANES), jnp.float32),
                   jax.ShapeDtypeStruct((B, N, _HEAD_LANES), jnp.float32)),
        grid=(B,),
        in_specs=in_specs,
        out_specs=(pl.BlockSpec((None, N, _HEAD_LANES), lambda g: (g, 0, 0)),
                   pl.BlockSpec((None, N, _HEAD_LANES), lambda g: (g, 0, 0))),
        compiler_params=pltpu.CompilerParams(
            dimension_semantics=("parallel",),       # batch axis -> both TCs on v7x
            vmem_limit_bytes=32 * 1024 * 1024),
    )(a_norm_b.astype(jnp.bfloat16), h0_b.astype(jnp.bfloat16),
      *flat_layer_args, wh)

    # Head finalization on the host (trivial XLA work, keeps kernel lean):
    h_out = h_pad[..., :out_feats]                                  # (B, N, out_feats)
    pi = head[..., 0:1] + params["bp"]                              # (B, N, 1)
    # V = mean_nodes(H) @ wv + bv == mean over rows of (H @ wv) + bv
    v = jnp.mean(head[..., 1:2], axis=1, keepdims=True) + params["bv"]  # (B, 1, 1)
    return pi, v, h_out


# pure-JAX f32 reference (single graph) for verification
def egnnc_reference(a_norm, h0, layer_params, policy_params, value_params):
    h = h0
    n_layers = len(layer_params)
    for i, (w, b) in enumerate(layer_params):
        h = a_norm @ h @ w + b
        if (i != n_layers - 1) and (n_layers > 1):
            h = jnp.maximum(h, 0.0)
    wp, bp = policy_params
    wv, bv = value_params
    pi = h @ wp + bp
    m_n = jnp.mean(h, axis=0, keepdims=True)
    v = m_n @ wv + bv
    return pi, v, h


if __name__ == "__main__":
    # Small synthetic batch of graphs / model configuration.
    B = 4            # graphs in the batch (new leading grid axis)
    N = 128          # nodes per graph
    in_feats = 16
    hid_feats = 32
    out_feats = 32
    n_layers = 3

    key = jax.random.PRNGKey(0)
    k_graphs, k_model = jax.random.split(key)

    # Random directed graphs (dense representation) with edge weights.
    a_list, h_list = [], []
    gkeys = jax.random.split(k_graphs, B)
    for g in range(B):
        k_adj, k_w, k_feat = jax.random.split(gkeys[g], 3)
        adj_mask = (jax.random.uniform(k_adj, (N, N)) < 0.1).astype(jnp.float32)
        edge_w = jax.random.uniform(k_w, (N, N), minval=0.1, maxval=1.0)
        a_weighted = adj_mask * edge_w                           # A_w[dst, src]
        out_deg = jnp.maximum(jnp.sum(adj_mask, axis=0), 1.0)    # unweighted out-degree of src
        a_list.append(a_weighted / out_deg[None, :])             # 'left' normalization
        h_list.append(jax.random.normal(k_feat, (N, in_feats), jnp.float32) * 0.5)
    a_norm_b = jnp.stack(a_list)   # (B, N, N)
    h0_b = jnp.stack(h_list)       # (B, N, in_feats)

    def lin_init(k, fi, fo, scale=0.2):
        kw, kb = jax.random.split(k)
        w = jax.random.uniform(kw, (fi, fo), minval=-scale, maxval=scale, dtype=jnp.float32)
        b = jax.random.uniform(kb, (1, fo), minval=-scale, maxval=scale, dtype=jnp.float32)
        return w, b

    pkeys = jax.random.split(k_model, n_layers + 2)
    dims = [in_feats] + [hid_feats] * (n_layers - 1) + [out_feats]
    layer_params = [lin_init(pkeys[i], dims[i], dims[i + 1]) for i in range(n_layers)]
    policy_params = lin_init(pkeys[n_layers], out_feats, 1)     # nn.Linear(out_feats, 1)
    value_params = lin_init(pkeys[n_layers + 1], out_feats, 1)  # nn.Linear(out_feats, 1)

    # Prepare (pad / bf16-cast / merge heads) ONCE, outside the hot forward path.
    params = prepare_egnnc_params(layer_params, policy_params, value_params)

    pi, v, h = egnnc_forward(a_norm_b, h0_b, params)
    jax.block_until_ready((pi, v, h))

    assert pi.shape == (B, N, 1) and v.shape == (B, 1, 1) and h.shape == (B, N, out_feats)

    # Verify each graph against the f32 reference (tolerance covers bf16 MXU operands).
    for g in range(B):
        pi_ref, v_ref, h_ref = egnnc_reference(
            a_norm_b[g], h0_b[g], layer_params, policy_params, value_params)
        assert jnp.allclose(h[g], h_ref, atol=2e-2, rtol=2e-2)
        assert jnp.allclose(pi[g], pi_ref, atol=2e-2, rtol=2e-2)
        assert jnp.allclose(v[g], v_ref, atol=2e-2, rtol=2e-2)

    print("KERNEL_OK")
</pallas_src>

<mosaic_0001>
module attributes {stable_mosaic.version = 11 : i64} {
  func.func @egnnc_fused_kernel(%arg0: i32, %arg1: memref<1x128x128xbf16, #tpu.memory_space<vmem>>, %arg2: memref<1x128x16xbf16, #tpu.memory_space<vmem>>, %arg3: memref<16x32xbf16, #tpu.memory_space<vmem>>, %arg4: memref<1x32xf32, #tpu.memory_space<vmem>>, %arg5: memref<32x32xbf16, #tpu.memory_space<vmem>>, %arg6: memref<1x32xf32, #tpu.memory_space<vmem>>, %arg7: memref<32x128xbf16, #tpu.memory_space<vmem>>, %arg8: memref<1x128xf32, #tpu.memory_space<vmem>>, %arg9: memref<128x128xbf16, #tpu.memory_space<vmem>>, %arg10: memref<1x128x128xf32, #tpu.memory_space<vmem>>, %arg11: memref<1x128x128xf32, #tpu.memory_space<vmem>>) attributes {dimension_semantics = [#tpu.dimension_semantics<parallel>], iteration_bounds = array<i64: 4>, scalar_prefetch = 0 : i64, scratch_operands = 0 : i64, tpu.core_type = #tpu.core_type<tc>, window_params = [{transform_indices = @transform_0, window_bounds = array<i64: 1, 128, 128>}, {transform_indices = @transform_1, window_bounds = array<i64: 1, 128, 16>}, {pipeline_mode = #tpu.pipeline_mode<synchronous>, transform_indices = @transform_2, window_bounds = array<i64: 16, 32>}, {pipeline_mode = #tpu.pipeline_mode<synchronous>, transform_indices = @transform_3, window_bounds = array<i64: 1, 32>}, {pipeline_mode = #tpu.pipeline_mode<synchronous>, transform_indices = @transform_4, window_bounds = array<i64: 32, 32>}, {pipeline_mode = #tpu.pipeline_mode<synchronous>, transform_indices = @transform_5, window_bounds = array<i64: 1, 32>}, {pipeline_mode = #tpu.pipeline_mode<synchronous>, transform_indices = @transform_6, window_bounds = array<i64: 32, 128>}, {pipeline_mode = #tpu.pipeline_mode<synchronous>, transform_indices = @transform_7, window_bounds = array<i64: 1, 128>}, {pipeline_mode = #tpu.pipeline_mode<synchronous>, transform_indices = @transform_8, window_bounds = array<i64: 128, 128>}, {transform_indices = @transform_9, window_bounds = array<i64: 1, 128, 128>}, {transform_indices = @transform_10, window_bounds = array<i64: 1, 128, 128>}]} {
    %c0 = arith.constant 0 : index
    %c0_0 = arith.constant 0 : index
    %c0_1 = arith.constant 0 : index
    %0 = vector.load %arg2[%c0, %c0_0, %c0_1] : memref<1x128x16xbf16, #tpu.memory_space<vmem>>, vector<1x128x16xbf16>
    %1 = vector.shape_cast %0 : vector<1x128x16xbf16> to vector<128x16xbf16>
    %c0_2 = arith.constant 0 : index
    %c0_3 = arith.constant 0 : index
    %2 = vector.load %arg3[%c0_2, %c0_3] : memref<16x32xbf16, #tpu.memory_space<vmem>>, vector<16x32xbf16>
    %c0_4 = arith.constant 0 : index
    %c0_5 = arith.constant 0 : index
    %3 = vector.load %arg4[%c0_4, %c0_5] : memref<1x32xf32, #tpu.memory_space<vmem>>, vector<1x32xf32>
    %c0_6 = arith.constant 0 : index
    %c0_7 = arith.constant 0 : index
    %c0_8 = arith.constant 0 : index
    %4 = vector.load %arg1[%c0_6, %c0_7, %c0_8] : memref<1x128x128xbf16, #tpu.memory_space<vmem>>, vector<1x128x128xbf16>
    %5 = vector.shape_cast %4 : vector<1x128x128xbf16> to vector<128x128xbf16>
    %cst = arith.constant dense<0.000000e+00> : vector<128x16xf32>
    %6 = tpu.matmul %5, %1, %cst {dimension_numbers = #tpu.dot_dimension_numbers<[1], [0], [0], [1], [0, 0, 1, 1], [], []>} : vector<128x128xbf16>, vector<128x16xbf16>, vector<128x16xf32> -> vector<128x16xf32>
    %7 = arith.truncf %6 : vector<128x16xf32> to vector<128x16xbf16>
    %cst_9 = arith.constant dense<0.000000e+00> : vector<128x32xf32>
    %8 = tpu.matmul %7, %2, %cst_9 {dimension_numbers = #tpu.dot_dimension_numbers<[1], [0], [0], [1], [0, 0, 1, 1], [], []>} : vector<128x16xbf16>, vector<16x32xbf16>, vector<128x32xf32> -> vector<128x32xf32>
    %9 = vector.broadcast %3 : vector<1x32xf32> to vector<128x32xf32>
    %10 = arith.addf %8, %9 : vector<128x32xf32>
    %cst_10 = arith.constant 0.000000e+00 : f32
    %11 = vector.broadcast %cst_10 : f32 to vector<128x32xf32>
    %12 = arith.maximumf %10, %11 : vector<128x32xf32>
    %13 = arith.truncf %12 : vector<128x32xf32> to vector<128x32xbf16>
    %c0_11 = arith.constant 0 : index
    %c0_12 = arith.constant 0 : index
    %14 = vector.load %arg5[%c0_11, %c0_12] : memref<32x32xbf16, #tpu.memory_space<vmem>>, vector<32x32xbf16>
    %c0_13 = arith.constant 0 : index
    %c0_14 = arith.constant 0 : index
    %15 = vector.load %arg6[%c0_13, %c0_14] : memref<1x32xf32, #tpu.memory_space<vmem>>, vector<1x32xf32>
    %c0_15 = arith.constant 0 : index
    %c0_16 = arith.constant 0 : index
    %c0_17 = arith.constant 0 : index
    %16 = vector.load %arg1[%c0_15, %c0_16, %c0_17] : memref<1x128x128xbf16, #tpu.memory_space<vmem>>, vector<1x128x128xbf16>
    %17 = vector.shape_cast %16 : vector<1x128x128xbf16> to vector<128x128xbf16>
    %cst_18 = arith.constant dense<0.000000e+00> : vector<128x32xf32>
    %18 = tpu.matmul %17, %13, %cst_18 {dimension_numbers = #tpu.dot_dimension_numbers<[1], [0], [0], [1], [0, 0, 1, 1], [], []>} : vector<128x128xbf16>, vector<128x32xbf16>, vector<128x32xf32> -> vector<128x32xf32>
    %19 = arith.truncf %18 : vector<128x32xf32> to vector<128x32xbf16>
    %cst_19 = arith.constant dense<0.000000e+00> : vector<128x32xf32>
    %20 = tpu.matmul %19, %14, %cst_19 {dimension_numbers = #tpu.dot_dimension_numbers<[1], [0], [0], [1], [0, 0, 1, 1], [], []>} : vector<128x32xbf16>, vector<32x32xbf16>, vector<128x32xf32> -> vector<128x32xf32>
    %21 = vector.broadcast %15 : vector<1x32xf32> to vector<128x32xf32>
    %22 = arith.addf %20, %21 : vector<128x32xf32>
    %cst_20 = arith.constant 0.000000e+00 : f32
    %23 = vector.broadcast %cst_20 : f32 to vector<128x32xf32>
    %24 = arith.maximumf %22, %23 : vector<128x32xf32>
    %25 = arith.truncf %24 : vector<128x32xf32> to vector<128x32xbf16>
    %c0_21 = arith.constant 0 : index
    %c0_22 = arith.constant 0 : index
    %26 = vector.load %arg7[%c0_21, %c0_22] : memref<32x128xbf16, #tpu.memory_space<vmem>>, vector<32x128xbf16>
    %c0_23 = arith.constant 0 : index
    %c0_24 = arith.constant 0 : index
    %27 = vector.load %arg8[%c0_23, %c0_24] : memref<1x128xf32, #tpu.memory_space<vmem>>, vector<1x128xf32>
    %c0_25 = arith.constant 0 : index
    %c0_26 = arith.constant 0 : index
    %c0_27 = arith.constant 0 : index
    %28 = vector.load %arg1[%c0_25, %c0_26, %c0_27] : memref<1x128x128xbf16, #tpu.memory_space<vmem>>, vector<1x128x128xbf16>
    %29 = vector.shape_cast %28 : vector<1x128x128xbf16> to vector<128x128xbf16>
    %cst_28 = arith.constant dense<0.000000e+00> : vector<128x32xf32>
    %30 = tpu.matmul %29, %25, %cst_28 {dimension_numbers = #tpu.dot_dimension_numbers<[1], [0], [0], [1], [0, 0, 1, 1], [], []>} : vector<128x128xbf16>, vector<128x32xbf16>, vector<128x32xf32> -> vector<128x32xf32>
    %31 = arith.truncf %30 : vector<128x32xf32> to vector<128x32xbf16>
    %cst_29 = arith.constant dense<0.000000e+00> : vector<128x128xf32>
    %32 = tpu.matmul %31, %26, %cst_29 {dimension_numbers = #tpu.dot_dimension_numbers<[1], [0], [0], [1], [0, 0, 1, 1], [], []>} : vector<128x32xbf16>, vector<32x128xbf16>, vector<128x128xf32> -> vector<128x128xf32>
    %33 = vector.broadcast %27 : vector<1x128xf32> to vector<128x128xf32>
    %34 = arith.addf %32, %33 : vector<128x128xf32>
    %35 = arith.truncf %34 : vector<128x128xf32> to vector<128x128xbf16>
    %c0_30 = arith.constant 0 : index
    %c0_31 = arith.constant 0 : index
    %c0_32 = arith.constant 0 : index
    %36 = vector.load %arg10[%c0_30, %c0_31, %c0_32] : memref<1x128x128xf32, #tpu.memory_space<vmem>>, vector<1x128x128xf32>
    %37 = vector.shape_cast %36 : vector<1x128x128xf32> to vector<128x128xf32>
    %38 = vector.shape_cast %34 : vector<128x128xf32> to vector<1x128x128xf32>
    tpu.vector_store %arg10[%c0_30, %c0_31, %c0_32], %38 {strides = array<i32>} : memref<1x128x128xf32, #tpu.memory_space<vmem>>, vector<1x128x128xf32>,
    %c0_33 = arith.constant 0 : index
    %c0_34 = arith.constant 0 : index
    %39 = vector.load %arg9[%c0_33, %c0_34] : memref<128x128xbf16, #tpu.memory_space<vmem>>, vector<128x128xbf16>
    %cst_35 = arith.constant dense<0.000000e+00> : vector<128x128xf32>
    %40 = tpu.matmul %35, %39, %cst_35 {dimension_numbers = #tpu.dot_dimension_numbers<[1], [0], [0], [1], [0, 0, 1, 1], [], []>} : vector<128x128xbf16>, vector<128x128xbf16>, vector<128x128xf32> -> vector<128x128xf32>
    %c0_36 = arith.constant 0 : index
    %c0_37 = arith.constant 0 : index
    %c0_38 = arith.constant 0 : index
    %41 = vector.load %arg11[%c0_36, %c0_37, %c0_38] : memref<1x128x128xf32, #tpu.memory_space<vmem>>, vector<1x128x128xf32>
    %42 = vector.shape_cast %41 : vector<1x128x128xf32> to vector<128x128xf32>
    %43 = vector.shape_cast %40 : vector<128x128xf32> to vector<1x128x128xf32>
    tpu.vector_store %arg11[%c0_36, %c0_37, %c0_38], %43 {strides = array<i32>} : memref<1x128x128xf32, #tpu.memory_space<vmem>>, vector<1x128x128xf32>,
    return
  }
  func.func @transform_0(%arg0: i32) -> (i32, i32, i32) {
    %c0_i32 = arith.constant 0 : i32
    %c0_i32_0 = arith.constant 0 : i32
    %c0_i32_1 = arith.constant 0 : i32
    return %arg0, %c0_i32, %c0_i32_0 : i32, i32, i32
  }
  func.func @transform_1(%arg0: i32) -> (i32, i32, i32) {
    %c0_i32 = arith.constant 0 : i32
    %c0_i32_0 = arith.constant 0 : i32
    %c0_i32_1 = arith.constant 0 : i32
    return %arg0, %c0_i32, %c0_i32_0 : i32, i32, i32
  }
  func.func @transform_2(%arg0: i32) -> (i32, i32) {
    %c0_i32 = arith.constant 0 : i32
    %c0_i32_0 = arith.constant 0 : i32
    %c0_i32_1 = arith.constant 0 : i32
    return %c0_i32, %c0_i32_0 : i32, i32
  }
  func.func @transform_3(%arg0: i32) -> (i32, i32) {
    %c0_i32 = arith.constant 0 : i32
    %c0_i32_0 = arith.constant 0 : i32
    %c0_i32_1 = arith.constant 0 : i32
    return %c0_i32, %c0_i32_0 : i32, i32
  }
  func.func @transform_4(%arg0: i32) -> (i32, i32) {
    %c0_i32 = arith.constant 0 : i32
    %c0_i32_0 = arith.constant 0 : i32
    %c0_i32_1 = arith.constant 0 : i32
    return %c0_i32, %c0_i32_0 : i32, i32
  }
  func.func @transform_5(%arg0: i32) -> (i32, i32) {
    %c0_i32 = arith.constant 0 : i32
    %c0_i32_0 = arith.constant 0 : i32
    %c0_i32_1 = arith.constant 0 : i32
    return %c0_i32, %c0_i32_0 : i32, i32
  }
  func.func @transform_6(%arg0: i32) -> (i32, i32) {
    %c0_i32 = arith.constant 0 : i32
    %c0_i32_0 = arith.constant 0 : i32
    %c0_i32_1 = arith.constant 0 : i32
    return %c0_i32, %c0_i32_0 : i32, i32
  }
  func.func @transform_7(%arg0: i32) -> (i32, i32) {
    %c0_i32 = arith.constant 0 : i32
    %c0_i32_0 = arith.constant 0 : i32
    %c0_i32_1 = arith.constant 0 : i32
    return %c0_i32, %c0_i32_0 : i32, i32
  }
  func.func @transform_8(%arg0: i32) -> (i32, i32) {
    %c0_i32 = arith.constant 0 : i32
    %c0_i32_0 = arith.constant 0 : i32
    %c0_i32_1 = arith.constant 0 : i32
    return %c0_i32, %c0_i32_0 : i32, i32
  }
  func.func @transform_9(%arg0: i32) -> (i32, i32, i32) {
    %c0_i32 = arith.constant 0 : i32
    %c0_i32_0 = arith.constant 0 : i32
    %c0_i32_1 = arith.constant 0 : i32
    return %arg0, %c0_i32, %c0_i32_0 : i32, i32, i32
  }
  func.func @transform_10(%arg0: i32) -> (i32, i32, i32) {
    %c0_i32 = arith.constant 0 : i32
    %c0_i32_0 = arith.constant 0 : i32
    %c0_i32_1 = arith.constant 0 : i32
    return %arg0, %c0_i32, %c0_i32_0 : i32, i32, i32
  }
}

</mosaic_0001>

<bundles_post_ra>
// kernel: tpu_custom_call.1
= control target key start
LH: loop header
LB: loop body
LE: loop exit
PB: predicated region body
PF: predicated region fallthrough
CT: control target
= control target key end

     0   :  { %16 = vsyncpa [#allocation3], 0  ;;  %s2742_s0 = inlined_call_operand.vmem [shape: bf16[4,128,128], index: 0, kind: input, shape index: {}]   ;;  %s2743_s1 = inlined_call_operand.vmem [shape: bf16[4,128,16], index: 1, kind: input, shape index: {}]   ;;  %s2744_s2 = inlined_call_operand.hbm [shape: bf16[16,32], index: 2, kind: input, shape index: {}]   ;;  %s2745_s3 = inlined_call_operand.vmem [shape: f32[1,32], index: 3, kind: input, shape index: {}]   ;;  %s2746_s4 = inlined_call_operand.vmem [shape: bf16[32,32], index: 4, kind: input, shape index: {}]   ;;  %s2747_s5 = inlined_call_operand.vmem [shape: f32[1,32], index: 5, kind: input, shape index: {}]   ;;  %s2748_s6 = inlined_call_operand.vmem [shape: bf16[32,128], index: 6, kind: input, shape index: {}]   ;;  %s2749_s7 = inlined_call_operand.vmem [shape: f32[1,128], index: 7, kind: input, shape index: {}]   ;;  %s2750_s8 = inlined_call_operand.hbm [shape: bf16[128,128], index: 8, kind: input, shape index: {}]   ;;  %s2751_s9 = inlined_call_operand.hbm [shape: f32[4,128,128], index: 9, kind: output, shape index: {0}]   ;;  %s2752_s10 = inlined_call_operand.hbm [shape: f32[4,128,128], index: 10, kind: output, shape index: {1}]  }
   0x1   :  { %17 = vsyncpa [#allocation6], 0 }
   0x2   :  { %18 = vsyncpa [#allocation4], 0 }
   0x3   :  { %20 = vsyncpa [#allocation4 + $0x1], 0 }
   0x4   :  { %21 = vsyncpa [#allocation9], 0 }
   0x5   :  { %23 = vsyncpa [#allocation9 + $0x1], 0  ;;  %s2383_s13 = smov 0   ;;  %s2385_s14 = smov 0  }
   0x6   :  { %s2387_s15 = smov 0   ;;  %s2389_s16 = smov 0  }
   0x7 LB: > { %2760 = sst [smem:[#allocation14_spill]] %s2314_s15  ;;  %s2404_s17 = sadd.s32 4294967295, %s2318_s16   ;;  %s2318_s16 = sphi %s2389_s16, %s2776_s16   ;;  %s2314_s15 = sphi %s2387_s15, %s2778_s15   ;;  %s2310_s14 = sphi %s2385_s14, %s2780_s14   ;;  %s2306_s13 = sphi %s2383_s13, %s2779_s13  }
   0x8   : > { %s1701_s18 = sadd.s32 4294967294, %s2318_s16   ;;  %s2408_s19 = sadd.s32 1, %s2318_s16  }
   0x9   : > { %2761 = sst [smem:[#allocation15_spill]] %s2408_s19  ;;  %s235_s20 = sadd.s32 1, %s2314_s15 }
   0xa   : > { %s232_s21 = ssub.s32 %s2318_s16, %s2408_s19  ;;  %p245_p0 = scmp.ne.s32.totalorder %s2314_s15, %s2310_s14 }
   0xb   : > { %p233_p1 = scmp.eq.s32.totalorder %s232_s21, 0  ;;  %p246_p2 = scmp.eq.s32.totalorder %s2404_s17, 3 }
   0xc   : > { %p251_p3 = scmp.ne.s32.totalorder %s2310_s14, %s2306_s13  ;;  %p252_p4 = scmp.eq.s32.totalorder %s1701_s18, 3 }
   0xd   : > { %s2419_s22 = scalar_select %p233_p1, %s2314_s15, %s235_s20  }
   0xe   : > { %p2421_p5 = por %p246_p2, %p245_p0  ;;  %p2425_p6 = por %p252_p4, %p251_p3 }
   0xf   : > { %2762 = sst [smem:[#allocation16_spill]] %s2419_s22  ;;  %p1702_p7 = scmp.ge.s32.totalorder %s2318_s16, 1 }
  0x10   : > { %s2763_s23 = scalar_select %p2421_p5, 1, 0 }
  0x11   : > { %s2764_s24 = scalar_select %p2425_p6, 1, 0 }
  0x12   : > { %p285_p8 = scmp.lt.s32.totalorder %s2318_s16, 5  ;;  %p2753_p9 = scmp.eq.s32.totalorder %s2404_s17, 0 }
  0x13   : > { %2765 = sst [smem:[#allocation17_spill]] %s2764_s24  ;;  %s2320_s26 = smov [#allocation2]  }
  0x14   : > { %p2432_p10 = pnand %p1702_p7, %p285_p8  ;;  %s297_s27 = sshll.u32 %s2320_s26, 4  ;;  %s298_s27 = int_to_ptr.vmem [resolvable:$true] %s297_s27 }
  0x15   : > { %s2321_s29 = smov [#allocation5]   ;;  %s2160_s18 = scalar_lea.hbm %s2744_s2, 128 }
  0x16   : > { %s2766_s25 = scalar_select %p2432_p10, 1, 0 }
  0x17   : > { %p2074_p11 = pneg %p2432_p10  ;;  %s325_s30 = sshll.u32 %s2321_s29, 4  ;;  %s2444_s30 = int_to_ptr.vmem [resolvable:$true] %s325_s30 }
  0x18   : > { %p2161_p13 = scmp.ne.s32.totalorder %s2744_s2, %s2160_s18  ;;  %p2167_p3 = scmp.lt.u32.totalorder %s2160_s18, %s2744_s2 }
  0x19   : > { %p2440_p12 = pnand %p2753_p9, %p2074_p11 }
  0x1b   : > { %p2162_p0 = pneg %p2440_p12 }
  0x1d   : > { %p2163_p1 = pnand %p2162_p0, %p2161_p13 }
  0x1f   : > { %p2164_p2 = pneg %p2163_p1 }
  0x21   : > { %p2169_p4 = pnand %p2167_p3, %p2164_p2 }
  0x23   : > { %2172 = shalt.err (!%p2169_p4)
}
  0x24   : > { %s2173_s29 = scalar_lea.vmem %s298_s27, 128  ;;  %p2181_p9 = scmp.lt.s32.totalorder %s298_s27, %s298_s27 }
  0x25   : > { %p2174_p7 = scmp.ne.s32.totalorder %s298_s27, %s2173_s29  ;;  %p2182_p6 = scmp.lt.s32.totalorder %s2173_s29, %s2173_s29 }
  0x27   : > { %p2176_p8 = pnand %p2174_p7, %p2162_p0  ;;  %p2183_p5 = por %p2182_p6, %p2181_p9 }
  0x29   : > { %p2177_p11 = pneg %p2176_p8 }
  0x2b   : > { %p2184_p10 = pnand %p2183_p5, %p2177_p11 }
  0x2d   : > { %2187 = shalt.err (!%p2184_p10)
}
  0x2e   : > { %s2322_s11 = smov 64   ;;  %s2323_s12 = smov 4  }
  0x2f   : > { %2077 = dma.hbm_to_vmem [thread:$0]  (!%p2440_p12), %s2744_s2, 128, %s298_s27, [#allocation3], %s2322_s11, %s2322_s11, %s2323_s12  }
  0x30   : > { %s2188_s26 = scalar_lea.hbm %s2750_s8, 1024 }
  0x31   : > { %p2189_p13 = scmp.ne.s32.totalorder %s2750_s8, %s2188_s26  ;;  %p2195_p9 = scmp.lt.u32.totalorder %s2188_s26, %s2750_s8 }
  0x33   : > { %p2191_p5 = pnand %p2189_p13, %p2162_p0 }
  0x35   : > { %p2192_p6 = pneg %p2191_p5 }
  0x37   : > { %p2197_p10 = pnand %p2195_p9, %p2192_p6 }
  0x39   : > { %2200 = shalt.err (!%p2197_p10)
}
  0x3a   : > { %s2201_s27 = scalar_lea.vmem %s2444_s30, 1024  ;;  %p2209_p4 = scmp.lt.s32.totalorder %s2444_s30, %s2444_s30 }
  0x3b   : > { %p2202_p1 = scmp.ne.s32.totalorder %s2444_s30, %s2201_s27  ;;  %p2210_p7 = scmp.lt.s32.totalorder %s2201_s27, %s2201_s27 }
  0x3d   : > { %p2204_p2 = pnand %p2202_p1, %p2162_p0  ;;  %p2211_p8 = por %p2210_p7, %p2209_p4 }
  0x3f   : > { %p2205_p3 = pneg %p2204_p2 }
  0x41   : > { %p2212_p11 = pnand %p2211_p8, %p2205_p3 }
  0x43   : > { %2215 = shalt.err (!%p2212_p11)
}
  0x44   : > { %2080 = dma.hbm_to_vmem [thread:$0]  (!%p2440_p12), %s2750_s8, 1024, %s2444_s30, [#allocation6], %s2322_s11, %s2322_s11, %s2323_s12  }
  0x45   : > { %p2768_p13 = scmp.ne.s32.totalorder %s2766_s25, 0 }
  0x46   : > { %p2769_p5 = scmp.eq.s32.totalorder (!%p2768_p13), %s2404_s17, 0 }
  0x47   : > { %357 = sbr.rel (%p2768_p13) target bundleno = 1755 (0x6db), region = 56 }
  0x4e   : > { %2289 = dma.done.wait (%p2769_p5), [#allocation3], 128   ;;  %p2770_p0 = pmov %p2769_p5 }
  0x50   : > { %2291 = vsyncadd (%p2770_p0), [#allocation3], 4294967168  ;;  %p2771_p6 = pmov %p2770_p0 }
  0x51   : > { %p2772_p9 = pmov %p2770_p0 }
  0x52   : > { %2293 = dma.done.wait (%p2771_p6), [#allocation6], 1024  }
  0x53   : > { %2295 = vsyncadd (%p2772_p9), [#allocation6], 4294966272  ;;  %p409_p10 = scmp.lt.s32.totalorder %s2404_s17, 3  ;;  %v2147_v16 = vld [vmem:[#allocation2] sm:$0xff]   ;;  %vm668_vm0 = vcmask 130048   ;;  %v2149_v42 = vld [vmem:[%s2746_s4 + $0x8] sm:$0xff]  }
  0x54   : > { %1908 = vmatprep.subr.bf16.mxu1 %v2147_v16  ;;  %v2148_v41 = vld [vmem:[%s2746_s4] sm:$0xff]   ;;  %vm942_vm1 = vcmask 261120   ;;  %s2604_s12 = sand.u32 1, %s2310_s14   ;;  %s1781_s26 = sshll.u32 %s2404_s17, 11 }
  0x55   : > { %s410_s24 = scalar_select %p409_p10, %s2404_s17, 3  ;;  %1909 = vmatpush3.bf16.msra.mxu1 %v2147_v16  ;;  %v1731_v43 = vld [vmem:[%s2745_s3] ss:$0 sm:$0xff] }
  0x56   : > { %s1709_s22 = sshll.u32 %s2604_s12, 7  ;;  %s2637_s19 = scalar_lea.hbm %s2751_s9, %s1781_s26 }
  0x57   : > { %s1779_s28 = sshll.u32 %s410_s24, 6  ;;  %s2612_s21 = scalar_lea.vmem [#allocation7], %s1709_s22 }
  0x58   : > { %s418_s11 = scalar_lea.vmem %s2743_s1, %s1779_s28  ;;  %s2511_s18 = scalar_lea.vmem %s2742_s0, %s1779_s28 }
  0x59   : > { %v2131_v0 = vld [vmem:[%s418_s11] sm:$0xff]   ;;  %v2132_v1 = vld [vmem:[%s418_s11 + $0x8] sm:$0xff]   ;;  %v2133_v2 = vld [vmem:[%s418_s11 + $0x10] sm:$0xff]   ;;  %s1557_s29 = sshll.u32 %s2612_s21, 4  ;;  %s1539_s24 = scalar_lea.sflag [#allocation4], %s2604_s12  ;;  %s2639_s29 = int_to_ptr.vmem [resolvable:$true] %s1557_s29 }
  0x5a   : > { %1876 = vmatprep.subr.bf16.mxu0 %v2131_v0  ;;  %v2134_v3 = vld [vmem:[%s418_s11 + $0x18] sm:$0xff]   ;;  %v2514_v4 = vld [vmem:[%s2511_s18] sm:$0xff]   ;;  %v2136_v6 = vld [vmem:[%s418_s11 + $0x28] sm:$0xff]   ;;  %s2216_s28 = scalar_lea.vmem %s2639_s29, 2048  ;;  %p2773_p1 = scmp.ne.s32.totalorder %s2763_s23, 0 }
  0x5b   : > { %1877 = vmatpush3.bf16.msra.mxu0 %v2131_v0  ;;  %1892 = vmatprep.mubr.bf16.mxu0 %v2514_v4  ;;  %v2135_v5 = vld [vmem:[%s418_s11 + $0x20] sm:$0xff]   ;;  %v2137_v7 = vld [vmem:[%s418_s11 + $0x30] sm:$0xff]   ;;  %v2138_v8 = vld [vmem:[%s418_s11 + $0x38] sm:$0xff]   ;;  %p2217_p12 = scmp.ne.s32.totalorder %s2639_s29, %s2216_s28  ;;  %s2324_s30 = smov [#allocation7]  }
  0x5c   : > { %1878 = vmatprep.subr.bf16.mxu0 %v2132_v1  ;;  %v2518_v9 = vld [vmem:[%s2511_s18 + $0x8] sm:$0xff]   ;;  %v2521_v10 = vld [vmem:[%s2511_s18 + $0x10] sm:$0xff]   ;;  %v2526_v11 = vld [vmem:[%s2511_s18 + $0x18] sm:$0xff]   ;;  %s2220_s25 = sshll.u32 %s2324_s30, 4  ;;  %s2221_s25 = int_to_ptr.vmem [resolvable:$false] %s2220_s25 }
  0x5d   : > { %v2529_v12 = vld [vmem:[%s2511_s18 + $0x20] sm:$0xff]   ;;  %v2534_v13 = vld [vmem:[%s2511_s18 + $0x28] sm:$0xff]   ;;  %v2537_v14 = vld [vmem:[%s2511_s18 + $0x30] sm:$0xff]   ;;  %p2218_p2 = pnand %p2217_p12, %p2773_p1  ;;  %s2222_s11 = scalar_lea.vmem %s2221_s25, 4096 }
  0x5e   : > { %v2542_v15 = vld [vmem:[%s2511_s18 + $0x38] sm:$0xff]   ;;  %p2223_p4 = scmp.lt.s32.totalorder %s2639_s29, %s2221_s25  ;;  %p2224_p7 = scmp.lt.s32.totalorder %s2222_s11, %s2216_s28 }
  0x5f   : > { %1879 = vmatpush3.bf16.msra.mxu0 %v2132_v1  ;;  %p2219_p3 = pneg %p2218_p2 }
  0x60   : > { %1880 = vmatprep.subr.bf16.mxu0 %v2133_v2  ;;  %p2225_p8 = por %p2224_p7, %p2223_p4 }
  0x62   : > { %p2226_p11 = pnand %p2225_p8, %p2219_p3 }
  0x63   : > { %1881 = vmatpush3.bf16.msra.mxu0 %v2133_v2 }
  0x64   : > { %1882 = vmatprep.subr.bf16.mxu0 %v2134_v3 }
  0x67   : > { %1883 = vmatpush3.bf16.msra.mxu0 %v2134_v3 }
  0x68   : > { %1884 = vmatprep.subr.bf16.mxu0 %v2135_v5 }
  0x6b   : > { %1885 = vmatpush3.bf16.msra.mxu0 %v2135_v5 }
  0x6c   : > { %1886 = vmatprep.subr.bf16.mxu0 %v2136_v6 }
  0x6f   : > { %1887 = vmatpush3.bf16.msra.mxu0 %v2136_v6 }
  0x70   : > { %1888 = vmatprep.subr.bf16.mxu0 %v2137_v7 }
  0x73   : > { %1889 = vmatpush3.bf16.msra.mxu0 %v2137_v7 }
  0x74   : > { %1890 = vmatprep.subr.bf16.mxu0 %v2138_v8 }
  0x77   : > { %1891 = vmatpush3.bf16.msra.mxu0 %v2138_v8 }
  0x78   : > { %1958 = vmatprep.subr.bf16.mxu0 %v2148_v41 }
  0x7a   : > { %1893 = vmatmul.mubr.bf16.vlgmr.msra.gmra.mrb[0].mxu0 %v2518_v9 }
  0x7b   : > { %1896 = vmatprep.mubr.bf16.mxu0 %v2521_v10  ;;  %1959 = vmatpush3.bf16.msra.mxu0 %v2148_v41 }
  0x7c   : > { %1960 = vmatprep.subr.bf16.mxu0 %v2149_v42 }
  0x7f   : > { %1961 = vmatpush3.bf16.msra.mxu0 %v2149_v42 }
  0x82   : > { %1897 = vmatmul.mubr.bf16.gmra.mrb[4].mxu0 %v2526_v11 }
  0x83   : > { %1900 = vmatprep.mubr.bf16.mxu0 %v2529_v12 }
  0x8a   : > { %1901 = vmatmul.mubr.bf16.gmra.mrb[8].mxu0 %v2534_v13 }
  0x8b   : > { %1904 = vmatprep.mubr.bf16.mxu0 %v2537_v14 }
  0x92   : > { %1905 = vmatmul.mubr.bf16.gmra.mrb[12].mxu0 %v2542_v15 }
 0x14d   : > { %v1894_v17 = vpop.f32.mrb[0].mxu0 }
 0x14e   : > { %v585_v18 = vpop.f32.mrb[1].mxu0 }
 0x14f   : > { %v1895_v19 = vpop.f32.mrb[2].mxu0 }
 0x150   : > { %v649_v20 = vpack.c.bf16 %v1895_v19, %v1894_v17  ;;  %v588_v21 = vpop.f32.mrb[3].mxu0 }
 0x151   : > { %v648_v22 = vpack.c.bf16 %v588_v21, %v585_v18 }
 0x153   : > { %1910 = vmatprep.mubr.msk.bf16.mxu1 %vm668_vm0, %v648_v22 }
 0x154   : > { %1911 = vmatmul.mubr.msk.bf16.vlgmr.msra.gmra.mrb[0].mxu1 %vm668_vm0, %v649_v20 }
 0x155   : > { %v1898_v23 = vpop.f32.mrb[4].mxu0 }
 0x156   : > { %v601_v24 = vpop.f32.mrb[5].mxu0 }
 0x157   : > { %v1899_v25 = vpop.f32.mrb[6].mxu0 }
 0x158   : > { %v651_v26 = vpack.c.bf16 %v1899_v25, %v1898_v23  ;;  %v604_v27 = vpop.f32.mrb[7].mxu0 }
 0x159   : > { %v650_v28 = vpack.c.bf16 %v604_v27, %v601_v24 }
 0x15b   : > { %1914 = vmatprep.mubr.msk.bf16.mxu1 %vm668_vm0, %v650_v28 }
 0x15c   : > { %1915 = vmatmul.mubr.msk.bf16.gmra.mrb[4].mxu1 %vm668_vm0, %v651_v26 }
 0x15d   : > { %v1902_v29 = vpop.f32.mrb[8].mxu0 }
 0x15e   : > { %v617_v30 = vpop.f32.mrb[9].mxu0 }
 0x15f   : > { %v1903_v31 = vpop.f32.mrb[10].mxu0 }
 0x160   : > { %v653_v32 = vpack.c.bf16 %v1903_v31, %v1902_v29  ;;  %v620_v33 = vpop.f32.mrb[11].mxu0 }
 0x161   : > { %v652_v34 = vpack.c.bf16 %v620_v33, %v617_v30 }
 0x163   : > { %1918 = vmatprep.mubr.msk.bf16.mxu1 %vm668_vm0, %v652_v34 }
 0x164   : > { %1919 = vmatmul.mubr.msk.bf16.gmra.mrb[8].mxu1 %vm668_vm0, %v653_v32 }
 0x165   : > { %v1906_v35 = vpop.f32.mrb[12].mxu0 }
 0x166   : > { %v633_v36 = vpop.f32.mrb[13].mxu0 }
 0x167   : > { %v1907_v37 = vpop.f32.mrb[14].mxu0 }
 0x168   : > { %v655_v38 = vpack.c.bf16 %v1907_v37, %v1906_v35  ;;  %v636_v39 = vpop.f32.mrb[15].mxu0 }
 0x169   : > { %v654_v40 = vpack.c.bf16 %v636_v39, %v633_v36 }
 0x16b   : > { %1922 = vmatprep.mubr.msk.bf16.mxu1 %vm668_vm0, %v654_v40 }
 0x16c   : > { %1923 = vmatmul.mubr.msk.bf16.gmra.mrb[12].mxu1 %vm668_vm0, %v655_v38 }
 0x16d   : > { %1942 = vmatprep.mubr.bf16.mxu1 %v2514_v4 }
 0x227   : > { %v1912_v44 = vpop.f32.mrb[0].mxu1 }
 0x228   : > { %v736_v45 = vadd.f32 %v1912_v44, %v1731_v43  ;;  %v727_v46 = vpop.f32.mrb[1].mxu1 }
 0x229   : > { %v728_v47 = vadd.f32 %v1731_v43, %v727_v46  ;;  %v1913_v48 = vpop.f32.mrb[2].mxu1 }
 0x22a   : > { %v739_v49 = vadd.f32 %v1913_v48, %v1731_v43  ;;  %v730_v50 = vpop.f32.mrb[3].mxu1  ;;  %v792_v52 = vmax.f32 %v736_v45, 0.0 }
 0x22b   : > { %v731_v51 = vadd.f32 %v1731_v43, %v730_v50  ;;  %v790_v54 = vmax.f32 %v728_v47, 0.0 }
 0x22c   : > { %v793_v53 = vmax.f32 %v739_v49, 0.0 }
 0x22d   : > { %v791_v55 = vmax.f32 %v731_v51, 0.0 }
 0x22e   : > { %v807_v56 = vpack.c.bf16 %v793_v53, %v792_v52 }
 0x22f   : > { %v806_v57 = vpack.c.bf16 %v791_v55, %v790_v54  ;;  %v1916_v58 = vpop.f32.mrb[4].mxu1 }
 0x230   : > { %v752_v59 = vadd.f32 %v1916_v58, %v1731_v43  ;;  %v743_v60 = vpop.f32.mrb[5].mxu1 }
 0x231   : > { %v744_v61 = vadd.f32 %v1731_v43, %v743_v60  ;;  %v1917_v62 = vpop.f32.mrb[6].mxu1  ;;  %1926 = vmatprep.subr.bf16.mxu1 %v806_v57 }
 0x232   : > { %v755_v63 = vadd.f32 %v1917_v62, %v1731_v43  ;;  %v746_v0 = vpop.f32.mrb[7].mxu1  ;;  %1927 = vmatpush3.bf16.msra.mxu1 %v806_v57  ;;  %v796_v2 = vmax.f32 %v752_v59, 0.0 }
 0x233   : > { %v747_v1 = vadd.f32 %v1731_v43, %v746_v0  ;;  %1928 = vmatprep.subr.bf16.mxu1 %v807_v56  ;;  %v794_v5 = vmax.f32 %v744_v61, 0.0 }
 0x234   : > { %v797_v3 = vmax.f32 %v755_v63, 0.0 }
 0x235   : > { %v795_v6 = vmax.f32 %v747_v1, 0.0 }
 0x236   : > { %v809_v7 = vpack.c.bf16 %v797_v3, %v796_v2  ;;  %1929 = vmatpush3.bf16.msra.mxu1 %v807_v56  ;;  %v2150_v3 = vld [vmem:[%s2748_s6] sm:$0xff]  }
 0x237   : > { %v808_v8 = vpack.c.bf16 %v795_v6, %v794_v5  ;;  %v1920_v16 = vpop.f32.mrb[8].mxu1  ;;  %v2151_v5 = vld [vmem:[%s2748_s6 + $0x8] sm:$0xff]   ;;  %2010 = vmatprep.subr.bf16.mxu0 %v2150_v3  ;;  %v1741_v6 = vld [vmem:[%s2747_s5] ss:$0 sm:$0xff] }
 0x238   : > { %v768_v17 = vadd.f32 %v1920_v16, %v1731_v43  ;;  %v759_v18 = vpop.f32.mrb[9].mxu1 }
 0x239   : > { %v760_v19 = vadd.f32 %v1731_v43, %v759_v18  ;;  %v1921_v20 = vpop.f32.mrb[10].mxu1  ;;  %1930 = vmatprep.subr.bf16.mxu1 %v808_v8 }
 0x23a   : > { %v771_v21 = vadd.f32 %v1921_v20, %v1731_v43  ;;  %v762_v22 = vpop.f32.mrb[11].mxu1  ;;  %1931 = vmatpush3.bf16.msra.mxu1 %v808_v8  ;;  %v800_v24 = vmax.f32 %v768_v17, 0.0 }
 0x23b   : > { %v763_v23 = vadd.f32 %v1731_v43, %v762_v22  ;;  %1932 = vmatprep.subr.bf16.mxu1 %v809_v7  ;;  %v798_v26 = vmax.f32 %v760_v19, 0.0 }
 0x23c   : > { %v801_v25 = vmax.f32 %v771_v21, 0.0 }
 0x23d   : > { %v799_v27 = vmax.f32 %v763_v23, 0.0 }
 0x23e   : > { %v811_v28 = vpack.c.bf16 %v801_v25, %v800_v24  ;;  %1933 = vmatpush3.bf16.msra.mxu1 %v809_v7 }
 0x23f   : > { %v810_v29 = vpack.c.bf16 %v799_v27, %v798_v26  ;;  %v1924_v30 = vpop.f32.mrb[12].mxu1 }
 0x240   : > { %v784_v31 = vadd.f32 %v1924_v30, %v1731_v43  ;;  %v775_v32 = vpop.f32.mrb[13].mxu1 }
 0x241   : > { %v776_v33 = vadd.f32 %v1731_v43, %v775_v32  ;;  %v1925_v34 = vpop.f32.mrb[14].mxu1  ;;  %1934 = vmatprep.subr.bf16.mxu1 %v810_v29 }
 0x242   : > { %v787_v35 = vadd.f32 %v1925_v34, %v1731_v43  ;;  %v778_v36 = vpop.f32.mrb[15].mxu1  ;;  %1935 = vmatpush3.bf16.msra.mxu1 %v810_v29  ;;  %v804_v38 = vmax.f32 %v784_v31, 0.0 }
 0x243   : > { %v779_v37 = vadd.f32 %v1731_v43, %v778_v36  ;;  %1936 = vmatprep.subr.bf16.mxu1 %v811_v28  ;;  %v802_v40 = vmax.f32 %v776_v33, 0.0 }
 0x244   : > { %v805_v39 = vmax.f32 %v787_v35, 0.0 }
 0x245   : > { %v803_v41 = vmax.f32 %v779_v37, 0.0 }
 0x246   : > { %v813_v42 = vpack.c.bf16 %v805_v39, %v804_v38  ;;  %1937 = vmatpush3.bf16.msra.mxu1 %v811_v28 }
 0x247   : > { %v812_v44 = vpack.c.bf16 %v803_v41, %v802_v40 }
 0x249   : > { %1938 = vmatprep.subr.bf16.mxu1 %v812_v44 }
 0x24a   : > { %1939 = vmatpush3.bf16.msra.mxu1 %v812_v44 }
 0x24b   : > { %1940 = vmatprep.subr.bf16.mxu1 %v813_v42 }
 0x24e   : > { %1941 = vmatpush3.bf16.msra.mxu1 %v813_v42 }
 0x251   : > { %1943 = vmatmul.mubr.bf16.vlgmr.msra.gmra.mrb[16].mxu1 %v2518_v9 }
 0x252   : > { %1946 = vmatprep.mubr.bf16.mxu1 %v2521_v10 }
 0x259   : > { %1947 = vmatmul.mubr.bf16.gmra.mrb[20].mxu1 %v2526_v11 }
 0x25a   : > { %1950 = vmatprep.mubr.bf16.mxu1 %v2529_v12 }
 0x261   : > { %1951 = vmatmul.mubr.bf16.gmra.mrb[24].mxu1 %v2534_v13 }
 0x262   : > { %1954 = vmatprep.mubr.bf16.mxu1 %v2537_v14 }
 0x269   : > { %1955 = vmatmul.mubr.bf16.gmra.mrb[28].mxu1 %v2542_v15 }
 0x26a   : > { %1994 = vmatprep.mubr.bf16.mxu1 %v2514_v4 }
 0x324   : > { %v1944_v43 = vpop.f32.mrb[16].mxu1 }
 0x325   : > { %v853_v45 = vpop.f32.mrb[17].mxu1 }
 0x326   : > { %v1945_v46 = vpop.f32.mrb[18].mxu1 }
 0x327   : > { %v917_v47 = vpack.c.bf16 %v1945_v46, %v1944_v43  ;;  %v856_v48 = vpop.f32.mrb[19].mxu1 }
 0x328   : > { %v916_v49 = vpack.c.bf16 %v856_v48, %v853_v45 }
 0x32a   : > { %1962 = vmatprep.mubr.msk.bf16.mxu0 %vm942_vm1, %v916_v49 }
 0x32b   : > { %1963 = vmatmul.mubr.msk.bf16.vlgmr.msra.gmra.mrb[16].mxu0 %vm942_vm1, %v917_v47 }
 0x32c   : > { %v1948_v50 = vpop.f32.mrb[20].mxu1  ;;  %2011 = vmatpush3.bf16.msra.mxu0 %v2150_v3 }
 0x32d   : > { %v869_v51 = vpop.f32.mrb[21].mxu1  ;;  %2012 = vmatprep.subr.bf16.mxu0 %v2151_v5 }
 0x32e   : > { %v1949_v52 = vpop.f32.mrb[22].mxu1 }
 0x32f   : > { %v919_v53 = vpack.c.bf16 %v1949_v52, %v1948_v50  ;;  %v872_v54 = vpop.f32.mrb[23].mxu1 }
 0x330   : > { %v918_v55 = vpack.c.bf16 %v872_v54, %v869_v51  ;;  %2013 = vmatpush3.bf16.msra.mxu0 %v2151_v5 }
 0x332   : > { %1966 = vmatprep.mubr.msk.bf16.mxu0 %vm942_vm1, %v918_v55 }
 0x333   : > { %1967 = vmatmul.mubr.msk.bf16.gmra.mrb[20].mxu0 %vm942_vm1, %v919_v53 }
 0x334   : > { %v1952_v4 = vpop.f32.mrb[24].mxu1 }
 0x335   : > { %v885_v56 = vpop.f32.mrb[25].mxu1 }
 0x336   : > { %v1953_v57 = vpop.f32.mrb[26].mxu1 }
 0x337   : > { %v921_v58 = vpack.c.bf16 %v1953_v57, %v1952_v4  ;;  %v888_v59 = vpop.f32.mrb[27].mxu1 }
 0x338   : > { %v920_v60 = vpack.c.bf16 %v888_v59, %v885_v56 }
 0x33a   : > { %1970 = vmatprep.mubr.msk.bf16.mxu0 %vm942_vm1, %v920_v60 }
 0x33b   : > { %1971 = vmatmul.mubr.msk.bf16.gmra.mrb[24].mxu0 %vm942_vm1, %v921_v58 }
 0x33c   : > { %v1956_v61 = vpop.f32.mrb[28].mxu1 }
 0x33d   : > { %v901_v62 = vpop.f32.mrb[29].mxu1 }
 0x33e   : > { %v1957_v63 = vpop.f32.mrb[30].mxu1 }
 0x33f   : > { %v923_v0 = vpack.c.bf16 %v1957_v63, %v1956_v61  ;;  %v904_v1 = vpop.f32.mrb[31].mxu1 }
 0x340   : > { %v922_v2 = vpack.c.bf16 %v904_v1, %v901_v62 }
 0x342   : > { %1974 = vmatprep.mubr.msk.bf16.mxu0 %vm942_vm1, %v922_v2 }
 0x343   : > { %1975 = vmatmul.mubr.msk.bf16.gmra.mrb[28].mxu0 %vm942_vm1, %v923_v0 }
 0x3fe   : > { %v1964_v7 = vpop.f32.mrb[16].mxu0 }
 0x3ff   : > { %v1010_v8 = vadd.f32 %v1964_v7, %v1741_v6  ;;  %v1001_v16 = vpop.f32.mrb[17].mxu0  ;;  %v2153_v7 = vld [vmem:[#allocation5 + $0x8] sm:$0xff]  }
 0x400   : > { %v1002_v17 = vadd.f32 %v1741_v6, %v1001_v16  ;;  %v1965_v18 = vpop.f32.mrb[18].mxu0 }
 0x401   : > { %v1013_v19 = vadd.f32 %v1965_v18, %v1741_v6  ;;  %v1004_v20 = vpop.f32.mrb[19].mxu0  ;;  %v1066_v22 = vmax.f32 %v1010_v8, 0.0  ;;  %v2154_v8 = vld [vmem:[#allocation5 + $0x10] sm:$0xff]  }
 0x402   : > { %v1005_v21 = vadd.f32 %v1741_v6, %v1004_v20  ;;  %v1064_v24 = vmax.f32 %v1002_v17, 0.0 }
 0x403   : > { %v1067_v23 = vmax.f32 %v1013_v19, 0.0 }
 0x404   : > { %v1065_v25 = vmax.f32 %v1005_v21, 0.0 }
 0x405   : > { %v1081_v26 = vpack.c.bf16 %v1067_v23, %v1066_v22 }
 0x406   : > { %v1080_v27 = vpack.c.bf16 %v1065_v25, %v1064_v24  ;;  %v1968_v28 = vpop.f32.mrb[20].mxu0 }
 0x407   : > { %v1026_v29 = vadd.f32 %v1968_v28, %v1741_v6  ;;  %v1017_v30 = vpop.f32.mrb[21].mxu0 }
 0x408   : > { %v1018_v31 = vadd.f32 %v1741_v6, %v1017_v30  ;;  %v1969_v32 = vpop.f32.mrb[22].mxu0  ;;  %1978 = vmatprep.subr.bf16.mxu1 %v1080_v27 }
 0x409   : > { %v1029_v33 = vadd.f32 %v1969_v32, %v1741_v6  ;;  %v1020_v34 = vpop.f32.mrb[23].mxu0  ;;  %1979 = vmatpush3.bf16.msra.mxu1 %v1080_v27  ;;  %v1070_v36 = vmax.f32 %v1026_v29, 0.0 }
 0x40a   : > { %v1021_v35 = vadd.f32 %v1741_v6, %v1020_v34  ;;  %1980 = vmatprep.subr.bf16.mxu1 %v1081_v26  ;;  %v1068_v38 = vmax.f32 %v1018_v31, 0.0 }
 0x40b   : > { %v1071_v37 = vmax.f32 %v1029_v33, 0.0 }
 0x40c   : > { %v1069_v39 = vmax.f32 %v1021_v35, 0.0 }
 0x40d   : > { %v1083_v40 = vpack.c.bf16 %v1071_v37, %v1070_v36  ;;  %1981 = vmatpush3.bf16.msra.mxu1 %v1081_v26  ;;  %v2158_v36 = vld [vmem:[#allocation5 + $0x30] sm:$0xff]   ;;  %v2159_v37 = vld [vmem:[#allocation5 + $0x38] sm:$0xff]  }
 0x40e   : > { %v1082_v41 = vpack.c.bf16 %v1069_v39, %v1068_v38  ;;  %v1972_v42 = vpop.f32.mrb[24].mxu0  ;;  %v1752_v38 = vld [vmem:[%s2749_s7] ss:$0 sm:$0xff] }
 0x40f   : > { %v1042_v44 = vadd.f32 %v1972_v42, %v1741_v6  ;;  %v1033_v43 = vpop.f32.mrb[25].mxu0 }
 0x410   : > { %v1034_v45 = vadd.f32 %v1741_v6, %v1033_v43  ;;  %v1973_v46 = vpop.f32.mrb[26].mxu0  ;;  %1982 = vmatprep.subr.bf16.mxu1 %v1082_v41 }
 0x411   : > { %v1045_v47 = vadd.f32 %v1973_v46, %v1741_v6  ;;  %v1036_v48 = vpop.f32.mrb[27].mxu0  ;;  %1983 = vmatpush3.bf16.msra.mxu1 %v1082_v41  ;;  %v1074_v50 = vmax.f32 %v1042_v44, 0.0 }
 0x412   : > { %v1037_v49 = vadd.f32 %v1741_v6, %v1036_v48  ;;  %1984 = vmatprep.subr.bf16.mxu1 %v1083_v40  ;;  %v1072_v52 = vmax.f32 %v1034_v45, 0.0 }
 0x413   : > { %v1075_v51 = vmax.f32 %v1045_v47, 0.0 }
 0x414   : > { %v1073_v53 = vmax.f32 %v1037_v49, 0.0 }
 0x415   : > { %v1085_v54 = vpack.c.bf16 %v1075_v51, %v1074_v50  ;;  %1985 = vmatpush3.bf16.msra.mxu1 %v1083_v40 }
 0x416   : > { %v1084_v55 = vpack.c.bf16 %v1073_v53, %v1072_v52  ;;  %v1976_v4 = vpop.f32.mrb[28].mxu0 }
 0x417   : > { %v1058_v56 = vadd.f32 %v1976_v4, %v1741_v6  ;;  %v1049_v57 = vpop.f32.mrb[29].mxu0 }
 0x418   : > { %v1050_v58 = vadd.f32 %v1741_v6, %v1049_v57  ;;  %v1977_v59 = vpop.f32.mrb[30].mxu0  ;;  %1986 = vmatprep.subr.bf16.mxu1 %v1084_v55 }
 0x419   : > { %v1061_v60 = vadd.f32 %v1977_v59, %v1741_v6  ;;  %v1052_v61 = vpop.f32.mrb[31].mxu0  ;;  %1987 = vmatpush3.bf16.msra.mxu1 %v1084_v55  ;;  %v1078_v63 = vmax.f32 %v1058_v56, 0.0 }
 0x41a   : > { %v1053_v62 = vadd.f32 %v1741_v6, %v1052_v61  ;;  %1988 = vmatprep.subr.bf16.mxu1 %v1085_v54  ;;  %v1076_v1 = vmax.f32 %v1050_v58, 0.0  ;;  %v2152_v6 = vld [vmem:[#allocation5] sm:$0xff]  }
 0x41b   : > { %v1079_v0 = vmax.f32 %v1061_v60, 0.0 }
 0x41c   : > { %v1077_v2 = vmax.f32 %v1053_v62, 0.0 }
 0x41d   : > { %v1087_v3 = vpack.c.bf16 %v1079_v0, %v1078_v63  ;;  %1989 = vmatpush3.bf16.msra.mxu1 %v1085_v54 }
 0x41e   : > { %v1086_v5 = vpack.c.bf16 %v1077_v2, %v1076_v1 }
 0x420   : > { %1990 = vmatprep.subr.bf16.mxu1 %v1086_v5 }
 0x421   : > { %1991 = vmatpush3.bf16.msra.mxu1 %v1086_v5 }
 0x422   : > { %1992 = vmatprep.subr.bf16.mxu1 %v1087_v3 }
 0x425   : > { %1993 = vmatpush3.bf16.msra.mxu1 %v1087_v3 }
 0x426   : > { %2030 = vmatprep.subr.bf16.mxu1 %v2152_v6 }
 0x428   : > { %1995 = vmatmul.mubr.bf16.vlgmr.msra.gmra.mrb[32].mxu1 %v2518_v9  ;;  %v2155_v9 = vld [vmem:[#allocation5 + $0x18] sm:$0xff]  }
 0x429   : > { %1998 = vmatprep.mubr.bf16.mxu1 %v2521_v10  ;;  %2031 = vmatpush3.bf16.msra.mxu1 %v2152_v6  ;;  %v2156_v10 = vld [vmem:[#allocation5 + $0x20] sm:$0xff]  }
 0x42a   : > { %2032 = vmatprep.subr.bf16.mxu1 %v2153_v7 }
 0x42d   : > { %2033 = vmatpush3.bf16.msra.mxu1 %v2153_v7 }
 0x42e   : > { %2034 = vmatprep.subr.bf16.mxu1 %v2154_v8 }
 0x430   : > { %1999 = vmatmul.mubr.bf16.gmra.mrb[36].mxu1 %v2526_v11  ;;  %v2157_v11 = vld [vmem:[#allocation5 + $0x28] sm:$0xff]  }
 0x431   : > { %2002 = vmatprep.mubr.bf16.mxu1 %v2529_v12  ;;  %2035 = vmatpush3.bf16.msra.mxu1 %v2154_v8 }
 0x432   : > { %2036 = vmatprep.subr.bf16.mxu1 %v2155_v9 }
 0x435   : > { %2037 = vmatpush3.bf16.msra.mxu1 %v2155_v9 }
 0x436   : > { %2038 = vmatprep.subr.bf16.mxu1 %v2156_v10 }
 0x438   : > { %2003 = vmatmul.mubr.bf16.gmra.mrb[40].mxu1 %v2534_v13 }
 0x439   : > { %2006 = vmatprep.mubr.bf16.mxu1 %v2537_v14  ;;  %2039 = vmatpush3.bf16.msra.mxu1 %v2156_v10 }
 0x43a   : > { %2040 = vmatprep.subr.bf16.mxu1 %v2157_v11 }
 0x43d   : > { %2041 = vmatpush3.bf16.msra.mxu1 %v2157_v11 }
 0x43e   : > { %2042 = vmatprep.subr.bf16.mxu1 %v2158_v36 }
 0x440   : > { %2007 = vmatmul.mubr.bf16.gmra.mrb[44].mxu1 %v2542_v15 }
 0x441   : > { %2043 = vmatpush3.bf16.msra.mxu1 %v2158_v36 }
 0x442   : > { %2044 = vmatprep.subr.bf16.mxu1 %v2159_v37 }
 0x445   : > { %2045 = vmatpush3.bf16.msra.mxu1 %v2159_v37 }
 0x4fb   : > { %v1996_v12 = vpop.f32.mrb[32].mxu1 }
 0x4fc   : > { %v1127_v13 = vpop.f32.mrb[33].mxu1 }
 0x4fd   : > { %v1997_v14 = vpop.f32.mrb[34].mxu1 }
 0x4fe   : > { %v1191_v15 = vpack.c.bf16 %v1997_v14, %v1996_v12  ;;  %v1130_v16 = vpop.f32.mrb[35].mxu1 }
 0x4ff   : > { %v1190_v17 = vpack.c.bf16 %v1130_v16, %v1127_v13 }
 0x501   : > { %2014 = vmatprep.mubr.msk.bf16.mxu0 %vm942_vm1, %v1190_v17 }
 0x502   : > { %2015 = vmatmul.mubr.msk.bf16.vlgmr.msra.gmra.mrb[32].mxu0 %vm942_vm1, %v1191_v15 }
 0x503   : > { %v2000_v18 = vpop.f32.mrb[36].mxu1 }
 0x504   : > { %v1143_v19 = vpop.f32.mrb[37].mxu1 }
 0x505   : > { %v2001_v20 = vpop.f32.mrb[38].mxu1 }
 0x506   : > { %v1193_v21 = vpack.c.bf16 %v2001_v20, %v2000_v18  ;;  %v1146_v22 = vpop.f32.mrb[39].mxu1 }
 0x507   : > { %v1192_v23 = vpack.c.bf16 %v1146_v22, %v1143_v19 }
 0x509   : > { %2018 = vmatprep.mubr.msk.bf16.mxu0 %vm942_vm1, %v1192_v23 }
 0x50a   : > { %2019 = vmatmul.mubr.msk.bf16.gmra.mrb[36].mxu0 %vm942_vm1, %v1193_v21 }
 0x50b   : > { %v2004_v24 = vpop.f32.mrb[40].mxu1 }
 0x50c   : > { %v1159_v25 = vpop.f32.mrb[41].mxu1 }
 0x50d   : > { %v2005_v26 = vpop.f32.mrb[42].mxu1 }
 0x50e   : > { %v1195_v27 = vpack.c.bf16 %v2005_v26, %v2004_v24  ;;  %v1162_v28 = vpop.f32.mrb[43].mxu1 }
 0x50f   : > { %v1194_v29 = vpack.c.bf16 %v1162_v28, %v1159_v25 }
 0x511   : > { %2022 = vmatprep.mubr.msk.bf16.mxu0 %vm942_vm1, %v1194_v29 }
 0x512   : > { %2023 = vmatmul.mubr.msk.bf16.gmra.mrb[40].mxu0 %vm942_vm1, %v1195_v27 }
 0x513   : > { %v2008_v30 = vpop.f32.mrb[44].mxu1 }
 0x514   : > { %v1175_v31 = vpop.f32.mrb[45].mxu1 }
 0x515   : > { %v2009_v32 = vpop.f32.mrb[46].mxu1 }
 0x516   : > { %v1197_v33 = vpack.c.bf16 %v2009_v32, %v2008_v30  ;;  %v1178_v34 = vpop.f32.mrb[47].mxu1 }
 0x517   : > { %v1196_v35 = vpack.c.bf16 %v1178_v34, %v1175_v31 }
 0x519   : > { %2026 = vmatprep.mubr.msk.bf16.mxu0 %vm942_vm1, %v1196_v35 }
 0x51a   : > { %2027 = vmatmul.mubr.msk.bf16.gmra.mrb[44].mxu0 %vm942_vm1, %v1197_v33 }
 0x5d5   : > { %v2016_v39 = vpop.f32.mrb[32].mxu0 }
 0x5d6   : > { %v1283_v40 = vadd.f32 %v2016_v39, %v1752_v38  ;;  %v1274_v41 = vpop.f32.mrb[33].mxu0 }
 0x5d7   : > { %v1275_v42 = vadd.f32 %v1752_v38, %v1274_v41  ;;  %v2017_v44 = vpop.f32.mrb[34].mxu0 }
 0x5d8   : > { %1347 = vst [vmem:[%s2612_s21 + $0x10] sm:$0xff] %v1283_v40  ;;  %v1286_v43 = vadd.f32 %v2017_v44, %v1752_v38  ;;  %v1277_v45 = vpop.f32.mrb[35].mxu0 }
 0x5d9   : > { %1345 = vst [vmem:[%s2612_s21] sm:$0xff] %v1275_v42  ;;  %v1278_v46 = vadd.f32 %v1752_v38, %v1277_v45 }
 0x5da   : > { %v1338_v47 = vpack.c.bf16 %v1286_v43, %v1283_v40  ;;  %1348 = vst [vmem:[%s2612_s21 + $0x18] sm:$0xff] %v1286_v43 }
 0x5db   : > { %v1337_v48 = vpack.c.bf16 %v1278_v46, %v1275_v42  ;;  %1346 = vst [vmem:[%s2612_s21 + $0x8] sm:$0xff] %v1278_v46 }
 0x5dd   : > { %v2020_v49 = vpop.f32.mrb[36].mxu0  ;;  %2046 = vmatprep.mubr.bf16.mxu1 %v1337_v48 }
 0x5de   : > { %v1299_v50 = vadd.f32 %v2020_v49, %v1752_v38  ;;  %v1290_v51 = vpop.f32.mrb[37].mxu0  ;;  %2047 = vmatmul.mubr.bf16.vlgmr.msra.gmra.mrb[48].mxu1 %v1338_v47 }
 0x5df   : > { %v1291_v52 = vadd.f32 %v1752_v38, %v1290_v51  ;;  %v2021_v53 = vpop.f32.mrb[38].mxu0 }
 0x5e0   : > { %1351 = vst [vmem:[%s2612_s21 + $0x30] sm:$0xff] %v1299_v50  ;;  %v1302_v54 = vadd.f32 %v2021_v53, %v1752_v38  ;;  %v1293_v55 = vpop.f32.mrb[39].mxu0 }
 0x5e1   : > { %1349 = vst [vmem:[%s2612_s21 + $0x20] sm:$0xff] %v1291_v52  ;;  %v1294_v4 = vadd.f32 %v1752_v38, %v1293_v55 }
 0x5e2   : > { %v1340_v56 = vpack.c.bf16 %v1302_v54, %v1299_v50  ;;  %1352 = vst [vmem:[%s2612_s21 + $0x38] sm:$0xff] %v1302_v54 }
 0x5e3   : > { %v1339_v57 = vpack.c.bf16 %v1294_v4, %v1291_v52  ;;  %1350 = vst [vmem:[%s2612_s21 + $0x28] sm:$0xff] %v1294_v4 }
 0x5e5   : > { %v2024_v58 = vpop.f32.mrb[40].mxu0  ;;  %2050 = vmatprep.mubr.bf16.mxu1 %v1339_v57 }
 0x5e6   : > { %v1315_v59 = vadd.f32 %v2024_v58, %v1752_v38  ;;  %v1306_v60 = vpop.f32.mrb[41].mxu0  ;;  %2051 = vmatmul.mubr.bf16.gmra.mrb[52].mxu1 %v1340_v56 }
 0x5e7   : > { %v1307_v61 = vadd.f32 %v1752_v38, %v1306_v60  ;;  %v2025_v62 = vpop.f32.mrb[42].mxu0 }
 0x5e8   : > { %1355 = vst [vmem:[%s2612_s21 + $0x50] sm:$0xff] %v1315_v59  ;;  %v1318_v63 = vadd.f32 %v2025_v62, %v1752_v38  ;;  %v1309_v0 = vpop.f32.mrb[43].mxu0 }
 0x5e9   : > { %1353 = vst [vmem:[%s2612_s21 + $0x40] sm:$0xff] %v1307_v61  ;;  %v1310_v1 = vadd.f32 %v1752_v38, %v1309_v0 }
 0x5ea   : > { %v1342_v2 = vpack.c.bf16 %v1318_v63, %v1315_v59  ;;  %1356 = vst [vmem:[%s2612_s21 + $0x58] sm:$0xff] %v1318_v63 }
 0x5eb   : > { %v1341_v3 = vpack.c.bf16 %v1310_v1, %v1307_v61  ;;  %1354 = vst [vmem:[%s2612_s21 + $0x48] sm:$0xff] %v1310_v1 }
 0x5ed   : > { %v2028_v5 = vpop.f32.mrb[44].mxu0  ;;  %2054 = vmatprep.mubr.bf16.mxu1 %v1341_v3 }
 0x5ee   : > { %v1331_v6 = vadd.f32 %v2028_v5, %v1752_v38  ;;  %v1322_v7 = vpop.f32.mrb[45].mxu0  ;;  %2055 = vmatmul.mubr.bf16.gmra.mrb[56].mxu1 %v1342_v2 }
 0x5ef   : > { %v1323_v8 = vadd.f32 %v1752_v38, %v1322_v7  ;;  %v2029_v9 = vpop.f32.mrb[46].mxu0 }
 0x5f0   : > { %1359 = vst [vmem:[%s2612_s21 + $0x70] sm:$0xff] %v1331_v6  ;;  %v1334_v10 = vadd.f32 %v2029_v9, %v1752_v38  ;;  %v1325_v11 = vpop.f32.mrb[47].mxu0 }
 0x5f1   : > { %1357 = vst [vmem:[%s2612_s21 + $0x60] sm:$0xff] %v1323_v8  ;;  %v1326_v12 = vadd.f32 %v1752_v38, %v1325_v11 }
 0x5f2   : > { %v1344_v13 = vpack.c.bf16 %v1334_v10, %v1331_v6  ;;  %1360 = vst [vmem:[%s2612_s21 + $0x78] sm:$0xff] %v1334_v10 }
 0x5f3   : > { %v1343_v14 = vpack.c.bf16 %v1326_v12, %v1323_v8  ;;  %1358 = vst [vmem:[%s2612_s21 + $0x68] sm:$0xff] %v1326_v12 }
 0x5f5   : > { %2058 = vmatprep.mubr.bf16.mxu1 %v1343_v14 }
 0x5f6   : > { %2059 = vmatmul.mubr.bf16.gmra.mrb[60].mxu1 %v1344_v13 }
 0x5f7   : > { %2229 = shalt.err (!%p2226_p11)
}
 0x5f8   : > { %s2230_s18 = scalar_lea.hbm %s2637_s19, 2048  ;;  %s2234_s27 = scalar_lea.hbm %s2751_s9, 8192 }
 0x5f9   : > { %p2231_p13 = scmp.ne.s32.totalorder %s2637_s19, %s2230_s18  ;;  %p2235_p6 = scmp.lt.u32.totalorder %s2637_s19, %s2751_s9 }
 0x5fa   : > { %p2236_p9 = scmp.lt.u32.totalorder %s2234_s27, %s2230_s18  ;;  %p2238_p12 = scmp.lt.u32.totalorder %s2230_s18, %s2637_s19 }
 0x5fb   : > { %p2232_p5 = pnand %p2231_p13, %p2773_p1 }
 0x5fc   : > { %p2237_p10 = por %p2236_p9, %p2235_p6 }
 0x5fd   : > { %p2233_p0 = pneg %p2232_p5 }
 0x5fe   : > { %p2239_p2 = por %p2238_p12, %p2237_p10 }
 0x600   : > { %p2240_p3 = pnand %p2239_p2, %p2233_p0 }
 0x602   : > { %2243 = shalt.err (!%p2240_p3)
}
 0x603   : > { %s2325_s28 = smov 128   ;;  %s2326_s25 = smov 8  }
 0x604   : > { %2070 = dma.vmem_to_hbm [thread:$0]  (%p2773_p1), %s2639_s29, 2048, %s2637_s19, %s1539_s24, %s2325_s28, %s2325_s28, %s2326_s25  }
 0x605   : > { %s2670_s11 = scalar_lea.vmem [#allocation8], %s1709_s22  ;;  %s2692_s24 = scalar_lea.hbm %s2752_s10, %s1781_s26 }
 0x606   : > { %s1573_s22 = sshll.u32 %s2670_s11, 4  ;;  %s1544_s18 = scalar_lea.sflag [#allocation9], %s2604_s12  ;;  %s2694_s22 = int_to_ptr.vmem [resolvable:$true] %s1573_s22 }
 0x607   : > { %s2244_s20 = scalar_lea.vmem %s2694_s22, 2048  ;;  %s2327_s17 = smov [#allocation8]  }
 0x608   : > { %p2245_p4 = scmp.ne.s32.totalorder %s2694_s22, %s2244_s20  ;;  %s2248_s21 = sshll.u32 %s2327_s17, 4  ;;  %s2249_s21 = int_to_ptr.vmem [resolvable:$false] %s2248_s21 }
 0x609   : > { %s2250_s27 = scalar_lea.vmem %s2249_s21, 4096  ;;  %p2251_p11 = scmp.lt.s32.totalorder %s2694_s22, %s2249_s21 }
 0x60a   : > { %p2246_p7 = pnand %p2245_p4, %p2773_p1  ;;  %p2252_p13 = scmp.lt.s32.totalorder %s2250_s27, %s2244_s20 }
 0x60c   : > { %p2247_p8 = pneg %p2246_p7  ;;  %p2253_p5 = por %p2252_p13, %p2251_p11 }
 0x60e   : > { %p2254_p0 = pnand %p2253_p5, %p2247_p8 }
 0x6b1   : > { %v2048_v15 = vpop.f32.mrb[48].mxu1 }
 0x6b2   : > { %1524 = vst [vmem:[%s2670_s11 + $0x10] sm:$0xff] %v2048_v15  ;;  %v1459_v16 = vpop.f32.mrb[49].mxu1 }
 0x6b3   : > { %1522 = vst [vmem:[%s2670_s11] sm:$0xff] %v1459_v16  ;;  %v2049_v17 = vpop.f32.mrb[50].mxu1 }
 0x6b4   : > { %1525 = vst [vmem:[%s2670_s11 + $0x18] sm:$0xff] %v2049_v17  ;;  %v1462_v18 = vpop.f32.mrb[51].mxu1 }
 0x6b5   : > { %1523 = vst [vmem:[%s2670_s11 + $0x8] sm:$0xff] %v1462_v18 }
 0x6b9   : > { %v2052_v19 = vpop.f32.mrb[52].mxu1 }
 0x6ba   : > { %1528 = vst [vmem:[%s2670_s11 + $0x30] sm:$0xff] %v2052_v19  ;;  %v1475_v20 = vpop.f32.mrb[53].mxu1 }
 0x6bb   : > { %1526 = vst [vmem:[%s2670_s11 + $0x20] sm:$0xff] %v1475_v20  ;;  %v2053_v21 = vpop.f32.mrb[54].mxu1 }
 0x6bc   : > { %1529 = vst [vmem:[%s2670_s11 + $0x38] sm:$0xff] %v2053_v21  ;;  %v1478_v22 = vpop.f32.mrb[55].mxu1 }
 0x6bd   : > { %1527 = vst [vmem:[%s2670_s11 + $0x28] sm:$0xff] %v1478_v22 }
 0x6c1   : > { %v2056_v23 = vpop.f32.mrb[56].mxu1 }
 0x6c2   : > { %1532 = vst [vmem:[%s2670_s11 + $0x50] sm:$0xff] %v2056_v23  ;;  %v1491_v24 = vpop.f32.mrb[57].mxu1 }
 0x6c3   : > { %1530 = vst [vmem:[%s2670_s11 + $0x40] sm:$0xff] %v1491_v24  ;;  %v2057_v25 = vpop.f32.mrb[58].mxu1 }
 0x6c4   : > { %1533 = vst [vmem:[%s2670_s11 + $0x58] sm:$0xff] %v2057_v25  ;;  %v1494_v26 = vpop.f32.mrb[59].mxu1 }
 0x6c5   : > { %1531 = vst [vmem:[%s2670_s11 + $0x48] sm:$0xff] %v1494_v26 }
 0x6c9   : > { %v2060_v27 = vpop.f32.mrb[60].mxu1 }
 0x6ca   : > { %1536 = vst [vmem:[%s2670_s11 + $0x70] sm:$0xff] %v2060_v27  ;;  %v1507_v28 = vpop.f32.mrb[61].mxu1 }
 0x6cb   : > { %1534 = vst [vmem:[%s2670_s11 + $0x60] sm:$0xff] %v1507_v28  ;;  %v2061_v29 = vpop.f32.mrb[62].mxu1 }
 0x6cc   : > { %1537 = vst [vmem:[%s2670_s11 + $0x78] sm:$0xff] %v2061_v29  ;;  %v1510_v30 = vpop.f32.mrb[63].mxu1 }
 0x6cd   : > { %1535 = vst [vmem:[%s2670_s11 + $0x68] sm:$0xff] %v1510_v30 }
 0x6ce   : > { %2257 = shalt.err (!%p2254_p0)
}
 0x6cf   : > { %s2258_s26 = scalar_lea.hbm %s2692_s24, 2048  ;;  %s2262_s11 = scalar_lea.hbm %s2752_s10, 8192 }
 0x6d0   : > { %p2259_p6 = scmp.ne.s32.totalorder %s2692_s24, %s2258_s26  ;;  %p2263_p12 = scmp.lt.u32.totalorder %s2692_s24, %s2752_s10 }
 0x6d1   : > { %p2264_p2 = scmp.lt.u32.totalorder %s2262_s11, %s2258_s26  ;;  %p2266_p4 = scmp.lt.u32.totalorder %s2258_s26, %s2692_s24 }
 0x6d2   : > { %p2260_p9 = pnand %p2259_p6, %p2773_p1 }
 0x6d3   : > { %p2265_p3 = por %p2264_p2, %p2263_p12 }
 0x6d4   : > { %p2261_p10 = pneg %p2260_p9 }
 0x6d5   : > { %p2267_p7 = por %p2266_p4, %p2265_p3 }
 0x6d7   : > { %p2268_p8 = pnand %p2267_p7, %p2261_p10 }
 0x6d9   : > { %2271 = shalt.err (!%p2268_p8)
}
 0x6da   : > { %2071 = dma.vmem_to_hbm [thread:$0]  (%p2773_p1), %s2694_s22, 2048, %s2692_s24, %s1544_s18, %s2325_s28, %s2325_s28, %s2326_s25  }
 0x6db PF: > { %s2774_s20 = sld [smem:[#allocation17_spill]]  ;;  %p2092_p11 = scmp.ge.s32.totalorder %s2318_s16, 2 }
 0x6dc   : > { %s1588_s17 = sand.u32 1, %s2306_s13  }
 0x6dd   : > { %s1589_s21 = scalar_lea.sflag [#allocation4], %s1588_s17 }
 0x6e1   : > { %p2775_p13 = scmp.ne.s32.totalorder %s2774_s20, 0 }
 0x6e3   : > { %p2082_p5 = pnand %p2092_p11, %p2775_p13 }
 0x6e5   : > { %2297 = dma.done.wait (!%p2082_p5), %s1589_s21, 2048  }
 0x6e6   : > { %2299 = vsyncadd (!%p2082_p5), %s1589_s21, 4294965248  ;;  %s1598_s23 = scalar_lea.sflag [#allocation9], %s1588_s17 }
 0x6e7   : > { %2301 = dma.done.wait (!%p2082_p5), %s1598_s23, 2048  }
 0x6e8   : > { %2303 = vsyncadd (!%p2082_p5), %s1598_s23, 4294965248  ;;  %s2776_s16 = sld [smem:[#allocation15_spill]]  ;;  %s2777_s12 = sld [smem:[#allocation14_spill]] }
 0x6e9   : > { %s2778_s15 = sld [smem:[#allocation16_spill]]  ;;  %s2779_s13 = smov %s2310_s14 }
 0x6ee   : > { %p26_p1 = scmp.ge.s32.totalorder %s2776_s16, 6   ;;  %s2780_s14 = smov %s2777_s12 }
 0x6f0   :  { %28 = sbr.rel (!%p26_p1) target bundleno = 7 (0x7), region = 120 }
 0x6f7   :  { %1603 = vsyncpa [#allocation3], 1 }
 0x6f8   :  { %1605 = vsyncpa [#allocation3 + $0x1], 1 }
 0x6f9   :  { %1606 = vsyncpa [#allocation6], 1 }
 0x6fa   :  { %1607 = vsyncpa [#allocation4], 1 }
 0x6fb   :  { %1609 = vsyncpa [#allocation4 + $0x1], 1 }
 0x6fc   :  { %1610 = vsyncpa [#allocation9], 1 }
 0x6fd   :  { %1612 = vsyncpa [#allocation9 + $0x1], 1 }

</bundles_post_ra>
